<compile_context>
chip_gen: v6e
topology: v6e:2x2x1
jax: 0.10.0
libtpu: 0.0.40
codegen_flags: <defaults>
</compile_context>

<pallas_src>
import functools

import jax
import jax.numpy as jnp
from jax.experimental import pallas as pl
from jax.experimental.pallas import tpu as pltpu


def _round_up(x, m):
    return ((x + m - 1) // m) * m


# ----------------------------- Pallas kernel ------------------------------ #
def _pnn_kernel(z_ref,        # [TB, F*E]          f32  gathered embeddings (pipelined)
                dense_ref,    # [TB, D]            f32  numeric features (pipelined)
                wprod_ref,    # [(F+1)*F*E, H0]    cdt  stacked [Wz ; Wp_expanded]
                lb_ref,       # [1, H0]            f32
                w1p_ref,      # [H0, H1]           cdt
                w1d_ref,      # [D,  H1]           cdt
                b1_ref,       # [1, H1]            f32
                w2_ref,       # [H1, H2]           cdt
                b2_ref,       # [1, H2]            f32
                wft_ref,      # [1, H2]            cdt  (final weight as a row)
                bf_ref,       # [1, 1]             f32
                out_ref,      # [1, TB]            f32  lane-dense sigmoid row
                *, F, E):
    cdt = wprod_ref.dtype                       # MXU operand dtype (f32 or bf16)
    z = z_ref[...]                              # [TB, F*E]  f32

    # ---- product layer (mode='in') -------------------------------------------
    # pin = [ z | G ] with G[b, f*F*E + g*E + e] = z[b,f,e] * z[b,g,e].  The
    # reduction over e and both the w_z / w_p contractions are folded into a
    # single MXU matmul against w_prod = [Wz ; Wp_expanded].
    parts = [z]
    for f in range(F):                           # F is small; static unroll
        z_f = z[:, f * E:(f + 1) * E]            # [TB, E] static lane slice
        parts.append(jnp.concatenate([z_f] * F, axis=1) * z)   # [TB, F*E]
    pin = jnp.concatenate(parts, axis=1)         # [TB, (F+1)*F*E]

    product = (jnp.dot(pin.astype(cdt), wprod_ref[...],
                       preferred_element_type=jnp.float32) + lb_ref[...])

    # ---- DNN: relu(cat([product, dense])) @ W1 == relu(product)@W1p + relu(dense)@W1d
    h0 = jnp.maximum(product, 0.0)
    d0 = jnp.maximum(dense_ref[...], 0.0)
    h1 = jnp.maximum(
        jnp.dot(h0.astype(cdt), w1p_ref[...], preferred_element_type=jnp.float32)
        + jnp.dot(d0.astype(cdt), w1d_ref[...], preferred_element_type=jnp.float32)
        + b1_ref[...], 0.0)
    h2 = jnp.maximum(
        jnp.dot(h1.astype(cdt), w2_ref[...], preferred_element_type=jnp.float32)
        + b2_ref[...], 0.0)

    # ---- final linear + sigmoid, produced directly as a lane-dense [1, TB] row ----
    # logits_row[0, b] = sum_h wf[h] * h2[b, h]   (q @ k^T style contraction; avoids
    # a (TB, 1) column and its masked vst.msk stores).
    logits_row = jax.lax.dot_general(
        wft_ref[...].astype(cdt), h2.astype(cdt),
        dimension_numbers=(((1,), (1,)), ((), ())),
        preferred_element_type=jnp.float32) + bf_ref[...]
    out_ref[...] = jax.nn.sigmoid(logits_row)    # unmasked lane-dense store


# ------------------------------ wrapper ----------------------------------- #
def pnn_forward(dense, idx, tables, w_z, w_p, l_b, w1, b1, w2, b2, wf, bf,
                *, block_b=512, compute_dtype=jnp.float32):
    """PNN forward. idx: [B, F] int ids; tables: [F, V, E]; w_p: [F, F, H0] ('in' mode)."""
    B, D = dense.shape
    F, V, E = tables.shape
    H0 = w_z.shape[2]
    H1 = w1.shape[1]
    H2 = w2.shape[1]

    TB = min(block_b, _round_up(B, 8))          # batch tile (multiple of 8 sublanes)
    B_pad = _round_up(B, TB)
    pad = B_pad - B
    n_tiles = B_pad // TB                       # v7x: keep >= 2 at real batch sizes

    # ---- embedding gather with XLA (outside the kernel's DMA path) ----
    rows = idx.astype(jnp.int32) + (jnp.arange(F, dtype=jnp.int32) * V)[None, :]
    z_flat = jnp.take(tables.reshape(F * V, E).astype(jnp.float32),
                      rows.reshape(-1), axis=0).reshape(B, F * E)
    z_flat = jnp.pad(z_flat, ((0, pad), (0, 0)))
    dense_p = jnp.pad(dense.astype(jnp.float32), ((0, pad), (0, 0)))

    # ---- fold the whole product layer into one weight matrix ----
    wz_mat = w_z.reshape(F * E, H0).astype(jnp.float32)                    # [(f,e), h]
    wp_big = jnp.broadcast_to(w_p[:, :, None, :].astype(jnp.float32),
                              (F, F, E, H0)).reshape(F * F * E, H0)        # [(f,g,e), h]
    w_prod = jnp.concatenate([wz_mat, wp_big], axis=0).astype(compute_dtype)

    w1p = w1[:H0, :].astype(compute_dtype)      # W1 split: product part / dense part
    w1d = w1[H0:, :].astype(compute_dtype)

    const = lambda i: (0, 0)                    # weights: VMEM-resident, not re-fetched

    in_specs = [
        pl.BlockSpec((TB, F * E), lambda i: (i, 0)),      # z (pipelined per tile)
        pl.BlockSpec((TB, D), lambda i: (i, 0)),          # dense (pipelined per tile)
        pl.BlockSpec(((F + 1) * F * E, H0), const),       # w_prod
        pl.BlockSpec((1, H0), const),                     # l_b
        pl.BlockSpec((H0, H1), const),                    # w1 (product part)
        pl.BlockSpec((D, H1), const),                     # w1 (dense part)
        pl.BlockSpec((1, H1), const),                     # b1
        pl.BlockSpec((H1, H2), const),                    # w2
        pl.BlockSpec((1, H2), const),                     # b2
        pl.BlockSpec((1, H2), const),                     # wf (row layout)
        pl.BlockSpec((1, 1), const),                      # bf
    ]
    out_spec = pl.BlockSpec((1, TB), lambda i: (0, i))    # lane-dense output row

    flops = (2 * B_pad * ((F + 1) * F * E * H0 + (H0 + D) * H1 + H1 * H2 + H2)
             + B_pad * F * F * E)
    bytes_accessed = 4 * (B_pad * (F * E + D + 1)
                          + ((F + 1) * F * E + 1) * H0
                          + (H0 + D + 1) * H1 + (H1 + 1) * H2 + H2 + 1)

    out = pl.pallas_call(
        functools.partial(_pnn_kernel, F=F, E=E),
        out_shape=jax.ShapeDtypeStruct((1, B_pad), jnp.float32),
        grid=(n_tiles,),
        in_specs=in_specs,
        out_specs=out_spec,
        compiler_params=pltpu.CompilerParams(
            dimension_semantics=("parallel",),
            vmem_limit_bytes=32 * 1024 * 1024,
        ),
        cost_estimate=pl.CostEstimate(flops=flops, transcendentals=2 * B_pad,
                                      bytes_accessed=bytes_accessed),
    )(z_flat, dense_p, w_prod,
      l_b.reshape(1, H0).astype(jnp.float32),
      w1p, w1d, b1.reshape(1, H1).astype(jnp.float32),
      w2.astype(compute_dtype), b2.reshape(1, H2).astype(jnp.float32),
      wf.reshape(1, H2).astype(compute_dtype), bf.reshape(1, 1).astype(jnp.float32))
    return out[0, :B]


# --------------------------- pure-JAX reference ---------------------------- #
def pnn_reference(dense, idx, tables, w_z, w_p, l_b, w1, b1, w2, b2, wf, bf):
    B, F = idx.shape
    E = tables.shape[2]
    H0 = w_z.shape[2]
    embeds = jnp.stack([tables[f][idx[:, f]] for f in range(F)], axis=1)   # [B,F,E]
    l_z = embeds.reshape(B, -1) @ w_z.reshape(F * E, H0)
    p = jnp.einsum('bfe,bge->bfg', embeds, embeds)
    l_p = p.reshape(B, -1) @ w_p.reshape(F * F, H0)
    product = l_p + l_z + l_b
    l1 = jax.nn.relu(jnp.concatenate([product, dense], axis=-1))
    h1 = jax.nn.relu(l1 @ w1 + b1)
    h2 = jax.nn.relu(h1 @ w2 + b2)
    return jax.nn.sigmoid(h2 @ wf + bf).reshape(-1)


if __name__ == "__main__":
    # ---- small deterministic config (mirrors the torch module's __init__) ----
    B = 8                 # batch
    dense_num = 3         # numeric features
    field_num = 4         # sparse (categorical) fields
    vocab = 20            # feat_num per sparse field
    embed_dim = 8         # embedding dim
    hidden_units = [32, 64, 32]   # hidden_units[0] = product output dim H0
    H0 = hidden_units[0]
    dnn_in = H0 + dense_num       # hidden_units[0] += dense_num in PNN.__init__

    key = jax.random.PRNGKey(0)
    ks = jax.random.split(key, 12)

    # ---- inputs: x = [dense | sparse_ids] as in the torch forward ----
    dense_inputs = jax.random.normal(ks[0], (B, dense_num), jnp.float32)
    sparse_idx = jax.random.randint(ks[1], (B, field_num), 0, vocab, jnp.int32)

    # ---- parameters (deterministic synthetic init, torch shapes) ----
    tables = jax.random.normal(ks[2], (field_num, vocab, embed_dim), jnp.float32)
    w_z = jax.random.uniform(ks[3], (field_num, embed_dim, H0), jnp.float32)
    w_p = jax.random.uniform(ks[4], (field_num, field_num, H0), jnp.float32)
    l_b = jax.random.uniform(ks[5], (H0,), jnp.float32)

    def linear_init(k, fan_in, fan_out):
        kw, kb = jax.random.split(k)
        bound = 1.0 / jnp.sqrt(fan_in)
        w = jax.random.uniform(kw, (fan_in, fan_out), jnp.float32, -bound, bound)
        b = jax.random.uniform(kb, (1, fan_out), jnp.float32, -bound, bound)
        return w, b

    # DNN: Linear(dnn_in, 64) -> ReLU -> Linear(64, 32) -> ReLU ; dense_final: Linear(32, 1)
    w1, b1 = linear_init(ks[6], dnn_in, hidden_units[1])
    w2, b2 = linear_init(ks[7], hidden_units[1], hidden_units[2])
    wf, bf = linear_init(ks[8], hidden_units[2], 1)

    args = (dense_inputs, sparse_idx, tables, w_z, w_p, l_b, w1, b1, w2, b2, wf, bf)

    ref = jax.block_until_ready(pnn_reference(*args))

    # f32 MXU operands: exact semantics check against the reference.
    out = jax.block_until_ready(pnn_forward(*args, block_b=512,
                                            compute_dtype=jnp.float32))
    assert out.shape == (B,)
    assert jnp.allclose(out, ref, atol=1e-4, rtol=1e-4), (out, ref)

    # bf16 MXU operands (v6e/v7x recommendation), f32 accumulate: loose sanity check.
    out_bf16 = jax.block_until_ready(pnn_forward(*args, block_b=512,
                                                 compute_dtype=jnp.bfloat16))
    assert out_bf16.shape == (B,)
    assert bool(jnp.all(jnp.isfinite(out_bf16)))
    assert float(jnp.max(jnp.abs(out_bf16 - ref))) < 0.1, (out_bf16, ref)

    print("KERNEL_OK")
</pallas_src>

<mosaic_0001>
module attributes {stable_mosaic.version = 11 : i64} {
  func.func @_pnn_kernel(%arg0: i32, %arg1: memref<8x32xf32, #tpu.memory_space<vmem>>, %arg2: memref<8x3xf32, #tpu.memory_space<vmem>>, %arg3: memref<160x32xf32, #tpu.memory_space<vmem>>, %arg4: memref<1x32xf32, #tpu.memory_space<vmem>>, %arg5: memref<32x64xf32, #tpu.memory_space<vmem>>, %arg6: memref<3x64xf32, #tpu.memory_space<vmem>>, %arg7: memref<1x64xf32, #tpu.memory_space<vmem>>, %arg8: memref<64x32xf32, #tpu.memory_space<vmem>>, %arg9: memref<1x32xf32, #tpu.memory_space<vmem>>, %arg10: memref<1x32xf32, #tpu.memory_space<vmem>>, %arg11: memref<1x1xf32, #tpu.memory_space<vmem>>, %arg12: memref<1x8xf32, #tpu.memory_space<vmem>>) attributes {dimension_semantics = [#tpu.dimension_semantics<parallel>], iteration_bounds = array<i64: 1>, scalar_prefetch = 0 : i64, scratch_operands = 0 : i64, tpu.core_type = #tpu.core_type<tc>, window_params = [{transform_indices = @transform_0, window_bounds = array<i64: 8, 32>}, {transform_indices = @transform_1, window_bounds = array<i64: 8, 3>}, {pipeline_mode = #tpu.pipeline_mode<synchronous>, transform_indices = @transform_2, window_bounds = array<i64: 160, 32>}, {pipeline_mode = #tpu.pipeline_mode<synchronous>, transform_indices = @transform_3, window_bounds = array<i64: 1, 32>}, {pipeline_mode = #tpu.pipeline_mode<synchronous>, transform_indices = @transform_4, window_bounds = array<i64: 32, 64>}, {pipeline_mode = #tpu.pipeline_mode<synchronous>, transform_indices = @transform_5, window_bounds = array<i64: 3, 64>}, {pipeline_mode = #tpu.pipeline_mode<synchronous>, transform_indices = @transform_6, window_bounds = array<i64: 1, 64>}, {pipeline_mode = #tpu.pipeline_mode<synchronous>, transform_indices = @transform_7, window_bounds = array<i64: 64, 32>}, {pipeline_mode = #tpu.pipeline_mode<synchronous>, transform_indices = @transform_8, window_bounds = array<i64: 1, 32>}, {pipeline_mode = #tpu.pipeline_mode<synchronous>, transform_indices = @transform_9, window_bounds = array<i64: 1, 32>}, {pipeline_mode = #tpu.pipeline_mode<synchronous>, transform_indices = @transform_10, window_bounds = array<i64: 1, 1>}, {transform_indices = @transform_11, window_bounds = array<i64: 1, 8>}]} {
    %c0 = arith.constant 0 : index
    %c0_0 = arith.constant 0 : index
    %0 = vector.load %arg1[%c0, %c0_0] : memref<8x32xf32, #tpu.memory_space<vmem>>, vector<8x32xf32>
    %1 = vector.extract_strided_slice %0 {offsets = [0, 0], sizes = [8, 8], strides = [1, 1]} : vector<8x32xf32> to vector<8x8xf32>
    %2 = tpu.concatenate %1, %1, %1, %1 in 1 : vector<8x8xf32>, vector<8x8xf32>, vector<8x8xf32>, vector<8x8xf32> -> vector<8x32xf32>
    %3 = arith.mulf %2, %0 : vector<8x32xf32>
    %4 = vector.extract_strided_slice %0 {offsets = [0, 8], sizes = [8, 8], strides = [1, 1]} : vector<8x32xf32> to vector<8x8xf32>
    %5 = tpu.concatenate %4, %4, %4, %4 in 1 : vector<8x8xf32>, vector<8x8xf32>, vector<8x8xf32>, vector<8x8xf32> -> vector<8x32xf32>
    %6 = arith.mulf %5, %0 : vector<8x32xf32>
    %7 = vector.extract_strided_slice %0 {offsets = [0, 16], sizes = [8, 8], strides = [1, 1]} : vector<8x32xf32> to vector<8x8xf32>
    %8 = tpu.concatenate %7, %7, %7, %7 in 1 : vector<8x8xf32>, vector<8x8xf32>, vector<8x8xf32>, vector<8x8xf32> -> vector<8x32xf32>
    %9 = arith.mulf %8, %0 : vector<8x32xf32>
    %10 = vector.extract_strided_slice %0 {offsets = [0, 24], sizes = [8, 8], strides = [1, 1]} : vector<8x32xf32> to vector<8x8xf32>
    %11 = tpu.concatenate %10, %10, %10, %10 in 1 : vector<8x8xf32>, vector<8x8xf32>, vector<8x8xf32>, vector<8x8xf32> -> vector<8x32xf32>
    %12 = arith.mulf %11, %0 : vector<8x32xf32>
    %13 = tpu.concatenate %0, %3, %6, %9, %12 in 1 : vector<8x32xf32>, vector<8x32xf32>, vector<8x32xf32>, vector<8x32xf32>, vector<8x32xf32> -> vector<8x160xf32>
    %c0_1 = arith.constant 0 : index
    %c0_2 = arith.constant 0 : index
    %14 = vector.load %arg3[%c0_1, %c0_2] : memref<160x32xf32, #tpu.memory_space<vmem>>, vector<160x32xf32>
    %cst = arith.constant dense<0.000000e+00> : vector<8x32xf32>
    %15 = tpu.matmul %13, %14, %cst {dimension_numbers = #tpu.dot_dimension_numbers<[1], [0], [0], [1], [0, 0, 1, 1], [], []>} : vector<8x160xf32>, vector<160x32xf32>, vector<8x32xf32> -> vector<8x32xf32>
    %c0_3 = arith.constant 0 : index
    %c0_4 = arith.constant 0 : index
    %16 = vector.load %arg4[%c0_3, %c0_4] : memref<1x32xf32, #tpu.memory_space<vmem>>, vector<1x32xf32>
    %17 = vector.broadcast %16 : vector<1x32xf32> to vector<8x32xf32>
    %18 = arith.addf %15, %17 : vector<8x32xf32>
    %cst_5 = arith.constant 0.000000e+00 : f32
    %19 = vector.broadcast %cst_5 : f32 to vector<8x32xf32>
    %20 = arith.maximumf %18, %19 : vector<8x32xf32>
    %c0_6 = arith.constant 0 : index
    %c0_7 = arith.constant 0 : index
    %21 = vector.load %arg2[%c0_6, %c0_7] : memref<8x3xf32, #tpu.memory_space<vmem>>, vector<8x3xf32>
    %cst_8 = arith.constant 0.000000e+00 : f32
    %22 = vector.broadcast %cst_8 : f32 to vector<8x3xf32>
    %23 = arith.maximumf %21, %22 : vector<8x3xf32>
    %c0_9 = arith.constant 0 : index
    %c0_10 = arith.constant 0 : index
    %24 = vector.load %arg5[%c0_9, %c0_10] : memref<32x64xf32, #tpu.memory_space<vmem>>, vector<32x64xf32>
    %cst_11 = arith.constant dense<0.000000e+00> : vector<8x64xf32>
    %25 = tpu.matmul %20, %24, %cst_11 {dimension_numbers = #tpu.dot_dimension_numbers<[1], [0], [0], [1], [0, 0, 1, 1], [], []>} : vector<8x32xf32>, vector<32x64xf32>, vector<8x64xf32> -> vector<8x64xf32>
    %c0_12 = arith.constant 0 : index
    %c0_13 = arith.constant 0 : index
    %26 = vector.load %arg6[%c0_12, %c0_13] : memref<3x64xf32, #tpu.memory_space<vmem>>, vector<3x64xf32>
    %cst_14 = arith.constant dense<0.000000e+00> : vector<8x64xf32>
    %27 = tpu.matmul %23, %26, %cst_14 {dimension_numbers = #tpu.dot_dimension_numbers<[1], [0], [0], [1], [0, 0, 1, 1], [], []>} : vector<8x3xf32>, vector<3x64xf32>, vector<8x64xf32> -> vector<8x64xf32>
    %28 = arith.addf %25, %27 : vector<8x64xf32>
    %c0_15 = arith.constant 0 : index
    %c0_16 = arith.constant 0 : index
    %29 = vector.load %arg7[%c0_15, %c0_16] : memref<1x64xf32, #tpu.memory_space<vmem>>, vector<1x64xf32>
    %30 = vector.broadcast %29 : vector<1x64xf32> to vector<8x64xf32>
    %31 = arith.addf %28, %30 : vector<8x64xf32>
    %cst_17 = arith.constant 0.000000e+00 : f32
    %32 = vector.broadcast %cst_17 : f32 to vector<8x64xf32>
    %33 = arith.maximumf %31, %32 : vector<8x64xf32>
    %c0_18 = arith.constant 0 : index
    %c0_19 = arith.constant 0 : index
    %34 = vector.load %arg8[%c0_18, %c0_19] : memref<64x32xf32, #tpu.memory_space<vmem>>, vector<64x32xf32>
    %cst_20 = arith.constant dense<0.000000e+00> : vector<8x32xf32>
    %35 = tpu.matmul %33, %34, %cst_20 {dimension_numbers = #tpu.dot_dimension_numbers<[1], [0], [0], [1], [0, 0, 1, 1], [], []>} : vector<8x64xf32>, vector<64x32xf32>, vector<8x32xf32> -> vector<8x32xf32>
    %c0_21 = arith.constant 0 : index
    %c0_22 = arith.constant 0 : index
    %36 = vector.load %arg9[%c0_21, %c0_22] : memref<1x32xf32, #tpu.memory_space<vmem>>, vector<1x32xf32>
    %37 = vector.broadcast %36 : vector<1x32xf32> to vector<8x32xf32>
    %38 = arith.addf %35, %37 : vector<8x32xf32>
    %cst_23 = arith.constant 0.000000e+00 : f32
    %39 = vector.broadcast %cst_23 : f32 to vector<8x32xf32>
    %40 = arith.maximumf %38, %39 : vector<8x32xf32>
    %c0_24 = arith.constant 0 : index
    %c0_25 = arith.constant 0 : index
    %41 = vector.load %arg10[%c0_24, %c0_25] : memref<1x32xf32, #tpu.memory_space<vmem>>, vector<1x32xf32>
    %cst_26 = arith.constant dense<0.000000e+00> : vector<1x8xf32>
    %42 = tpu.matmul %41, %40, %cst_26 {dimension_numbers = #tpu.dot_dimension_numbers<[1], [1], [0], [0], [0, 0, 1, 0], [], []>} : vector<1x32xf32>, vector<8x32xf32>, vector<1x8xf32> -> vector<1x8xf32>
    %c0_27 = arith.constant 0 : index
    %c0_28 = arith.constant 0 : index
    %43 = vector.load %arg11[%c0_27, %c0_28] : memref<1x1xf32, #tpu.memory_space<vmem>>, vector<1x1xf32>
    %44 = vector.broadcast %43 : vector<1x1xf32> to vector<1x8xf32>
    %45 = arith.addf %42, %44 : vector<1x8xf32>
    %46 = arith.negf %45 : vector<1x8xf32>
    %47 = math.exp %46 : vector<1x8xf32>
    %cst_29 = arith.constant 1.000000e+00 : f32
    %48 = vector.broadcast %cst_29 : f32 to vector<1x8xf32>
    %49 = arith.addf %48, %47 : vector<1x8xf32>
    %50 = arith.divf %48, %49 : vector<1x8xf32>
    %c0_30 = arith.constant 0 : index
    %c0_31 = arith.constant 0 : index
    %51 = vector.load %arg12[%c0_30, %c0_31] : memref<1x8xf32, #tpu.memory_space<vmem>>, vector<1x8xf32>
    tpu.vector_store %arg12[%c0_30, %c0_31], %50 {strides = array<i32>} : memref<1x8xf32, #tpu.memory_space<vmem>>, vector<1x8xf32>,
    return
  }
  func.func @transform_0(%arg0: i32) -> (i32, i32) {
    %c0_i32 = arith.constant 0 : i32
    %c0_i32_0 = arith.constant 0 : i32
    return %arg0, %c0_i32 : i32, i32
  }
  func.func @transform_1(%arg0: i32) -> (i32, i32) {
    %c0_i32 = arith.constant 0 : i32
    %c0_i32_0 = arith.constant 0 : i32
    return %arg0, %c0_i32 : i32, i32
  }
  func.func @transform_2(%arg0: i32) -> (i32, i32) {
    %c0_i32 = arith.constant 0 : i32
    %c0_i32_0 = arith.constant 0 : i32
    %c0_i32_1 = arith.constant 0 : i32
    return %c0_i32, %c0_i32_0 : i32, i32
  }
  func.func @transform_3(%arg0: i32) -> (i32, i32) {
    %c0_i32 = arith.constant 0 : i32
    %c0_i32_0 = arith.constant 0 : i32
    %c0_i32_1 = arith.constant 0 : i32
    return %c0_i32, %c0_i32_0 : i32, i32
  }
  func.func @transform_4(%arg0: i32) -> (i32, i32) {
    %c0_i32 = arith.constant 0 : i32
    %c0_i32_0 = arith.constant 0 : i32
    %c0_i32_1 = arith.constant 0 : i32
    return %c0_i32, %c0_i32_0 : i32, i32
  }
  func.func @transform_5(%arg0: i32) -> (i32, i32) {
    %c0_i32 = arith.constant 0 : i32
    %c0_i32_0 = arith.constant 0 : i32
    %c0_i32_1 = arith.constant 0 : i32
    return %c0_i32, %c0_i32_0 : i32, i32
  }
  func.func @transform_6(%arg0: i32) -> (i32, i32) {
    %c0_i32 = arith.constant 0 : i32
    %c0_i32_0 = arith.constant 0 : i32
    %c0_i32_1 = arith.constant 0 : i32
    return %c0_i32, %c0_i32_0 : i32, i32
  }
  func.func @transform_7(%arg0: i32) -> (i32, i32) {
    %c0_i32 = arith.constant 0 : i32
    %c0_i32_0 = arith.constant 0 : i32
    %c0_i32_1 = arith.constant 0 : i32
    return %c0_i32, %c0_i32_0 : i32, i32
  }
  func.func @transform_8(%arg0: i32) -> (i32, i32) {
    %c0_i32 = arith.constant 0 : i32
    %c0_i32_0 = arith.constant 0 : i32
    %c0_i32_1 = arith.constant 0 : i32
    return %c0_i32, %c0_i32_0 : i32, i32
  }
  func.func @transform_9(%arg0: i32) -> (i32, i32) {
    %c0_i32 = arith.constant 0 : i32
    %c0_i32_0 = arith.constant 0 : i32
    %c0_i32_1 = arith.constant 0 : i32
    return %c0_i32, %c0_i32_0 : i32, i32
  }
  func.func @transform_10(%arg0: i32) -> (i32, i32) {
    %c0_i32 = arith.constant 0 : i32
    %c0_i32_0 = arith.constant 0 : i32
    %c0_i32_1 = arith.constant 0 : i32
    return %c0_i32, %c0_i32_0 : i32, i32
  }
  func.func @transform_11(%arg0: i32) -> (i32, i32) {
    %c0_i32 = arith.constant 0 : i32
    %c0_i32_0 = arith.constant 0 : i32
    return %c0_i32, %arg0 : i32, i32
  }
}

</mosaic_0001>

<bundles_post_ra>
// kernel: tpu_custom_call.1
= control target key start
LH: loop header
LB: loop body
LE: loop exit
PB: predicated region body
PF: predicated region fallthrough
CT: control target
= control target key end

     0   :  { %s948_s0 = inlined_call_operand.vmem [shape: f32[8,32], index: 0, kind: input, shape index: {}]   ;;  %s949_s1 = inlined_call_operand.vmem [shape: f32[8,3], index: 1, kind: input, shape index: {}]   ;;  %s950_s2 = inlined_call_operand.vmem [shape: f32[160,32], index: 2, kind: input, shape index: {}]   ;;  %s951_s3 = inlined_call_operand.vmem [shape: f32[1,32], index: 3, kind: input, shape index: {}]   ;;  %s952_s4 = inlined_call_operand.vmem [shape: f32[32,64], index: 4, kind: input, shape index: {}]   ;;  %s953_s5 = inlined_call_operand.vmem [shape: f32[3,64], index: 5, kind: input, shape index: {}]   ;;  %s954_s6 = inlined_call_operand.vmem [shape: f32[1,64], index: 6, kind: input, shape index: {}]   ;;  %s955_s7 = inlined_call_operand.vmem [shape: f32[64,32], index: 7, kind: input, shape index: {}]   ;;  %s956_s8 = inlined_call_operand.vmem [shape: f32[1,32], index: 8, kind: input, shape index: {}]   ;;  %s957_s9 = inlined_call_operand.vmem [shape: f32[1,32], index: 9, kind: input, shape index: {}]   ;;  %s958_s10 = inlined_call_operand.<no memory space> [shape: f32[1,1], index: 10, kind: input, shape index: {}]   ;;  %s959_s11 = inlined_call_operand.hbm [shape: f32[1,8], index: 11, kind: output, shape index: {}]  }
   0x1   :  { %v16_v0 = vstv %s958_s10 }
   0x2   :  { %17 = vst [vmem:[#allocation2] sm:$0x1] %v16_v0 }
   0x3   :  { %v753_v1 = vld [vmem:[%s948_s0] sm:$0xff]  ;;  %s674_s21 = smov 120   ;;  %s675_s22 = smov 8   ;;  %v113_v2 = vld [vmem:[%s950_s2 + $0x78] sm:$0xff]  ;;  %v676_v3 = vmov 0.0   ;;  %v112_v4 = vld [vmem:[%s950_s2 + $0x70] sm:$0xff] }
   0x4   :  { %59 = vrot.lane.b32.xlu1 %v753_v1, %s674_s21  ;;  %43 = vrot.lane.b32.xlu0 %v753_v1, %s675_s22  ;;  %s677_s0 = smov 24   ;;  %s678_s26 = smov 16   ;;  %v111_v5 = vld [vmem:[%s950_s2 + $0x68] sm:$0xff] }
   0x5   :  { %128 = vmatprep.subr.mxu0 %v676_v3  ;;  %593 = vmatprep.subr.mxu1 %v676_v3 }
   0x6   :  { %129 = vmatpush1.msra.mxu0 %v113_v2 }
   0x7   :  { %130 = vmatprep.subr.mxu0 %v676_v3 }
   0x8   :  { %49 = vrot.lane.b32.xlu1 %v753_v1, %s677_s0  ;;  %46 = vrot.lane.b32.xlu0 %v753_v1, %s678_s26 }
   0x9   :  { %131 = vmatpush1.msra.mxu0 %v112_v4 }
   0xa   :  { %132 = vmatprep.subr.mxu0 %v676_v3 }
   0xb   :  { %18 = vsyncpa [#allocation4], 0  ;;  %133 = vmatpush1.msra.mxu0 %v111_v5  ;;  %v110_v6 = vld [vmem:[%s950_s2 + $0x60] sm:$0xff]  ;;  %s679_s12 = smov 104   ;;  %s680_s13 = smov 112   ;;  %v109_v7 = vld [vmem:[%s950_s2 + $0x58] sm:$0xff] }
   0xc   :  { %73 = vrot.lane.b32.xlu1 %v753_v1, %s679_s12  ;;  %66 = vrot.lane.b32.xlu0 %v753_v1, %s680_s13  ;;  %v108_v8 = vld [vmem:[%s950_s2 + $0x50] sm:$0xff]  ;;  %v107_v9 = vld [vmem:[%s950_s2 + $0x48] sm:$0xff]  ;;  %vm52_vm0 = vcmask 64512   ;;  %vm54_vm1 = vcmask 130048   ;;  %vm56_vm2 = vcmask 195584   ;;  %vm210_vm3 = vcmask 1042432  }
   0xd   :  { %134 = vmatprep.subr.mxu0 %v676_v3  ;;  %v106_v10 = vld [vmem:[%s950_s2 + $0x40] sm:$0xff]  ;;  %v105_v11 = vld [vmem:[%s950_s2 + $0x38] sm:$0xff]  ;;  %v104_v12 = vld [vmem:[%s950_s2 + $0x30] sm:$0xff]  ;;  %vm206_vm4 = vcmask 23552   ;;  %vm681_vm5 = vmmov 0   ;;  %vm92_vm6 = vcmask 261120  }
   0xe   :  { %135 = vmatpush1.msra.mxu0 %v110_v6  ;;  %v103_v13 = vld [vmem:[%s950_s2 + $0x28] sm:$0xff]  ;;  %v102_v14 = vld [vmem:[%s950_s2 + $0x20] sm:$0xff]  ;;  %v101_v15 = vld [vmem:[%s950_s2 + $0x18] sm:$0xff]  ;;  %595 = vmatprep.mubr.msk.f32.mxu1 %vm681_vm5, %v676_v3  ;;  %s684_s28 = smov 96   ;;  %vm94_vm7 = vcmask 523264   ;;  %vm96_vm8 = vcmask 785408  }
   0xf   :  { %136 = vmatprep.subr.mxu0 %v676_v3  ;;  %v100_v16 = vld [vmem:[%s950_s2 + $0x10] sm:$0xff]  ;;  %v99_v17 = vld [vmem:[%s950_s2 + $0x8] sm:$0xff]  ;;  %v98_v18 = vld [vmem:[%s950_s2] sm:$0xff]  ;;  %vm548_vm9 = vcmask 57344  }
  0x10   :  { %137 = vmatpush1.msra.mxu0 %v109_v7  ;;  %v117_v19 = vld [vmem:[%s950_s2 + $0x98] sm:$0xff]  ;;  %v116_v20 = vld [vmem:[%s950_s2 + $0x90] sm:$0xff]  ;;  %v115_v21 = vld [vmem:[%s950_s2 + $0x88] sm:$0xff] }
  0x11   :  { %138 = vmatprep.subr.mxu0 %v676_v3  ;;  %v114_v24 = vld [vmem:[%s950_s2 + $0x80] sm:$0xff]  ;;  %v204_v29 = vld [vmem:[%s952_s4 + $0x18] sm:$0xff]  ;;  %v203_v55 = vld [vmem:[%s952_s4 + $0x10] sm:$0xff] }
  0x12   :  { %139 = vmatpush1.msra.mxu0 %v108_v8  ;;  %v205_v26 = vld [vmem:[%s953_s5] sm:$0x7]  ;;  %s683_s5 = smov 32   ;;  %v202_v56 = vld [vmem:[%s952_s4 + $0x8] sm:$0xff]  ;;  %v372_v2 = vld [vmem:[%s955_s7 + $0x30] sm:$0xff] }
  0x13   :  { %140 = vmatprep.subr.mxu0 %v676_v3  ;;  %v199_v27 = vld [vmem:[%s949_s1] sm:$0xff]  ;;  %594 = vmatpush3.msk.msra.mxu1 %vm210_vm3, %v205_v26  ;;  %s682_s1 = smov 64   ;;  %v371_v4 = vld [vmem:[%s955_s7 + $0x28] sm:$0xff]  ;;  %v369_v6 = vld [vmem:[%s955_s7 + $0x18] sm:$0xff] }
  0x14   :  { %141 = vmatpush1.msra.mxu0 %v107_v9  ;;  %v200_v28 = vmax.f32 %v199_v27, 0.0  ;;  %598 = vmatprep.subr.mxu1 %v676_v3  ;;  %v201_v57 = vld [vmem:[%s952_s4] sm:$0xff]  ;;  %v368_v7 = vld [vmem:[%s955_s7 + $0x10] sm:$0xff]  ;;  %v367_v8 = vld [vmem:[%s955_s7 + $0x8] sm:$0xff] }
  0x15   :  { %142 = vmatprep.subr.mxu0 %v676_v3  ;;  %v564_v60 = vld [vmem:[%s951_s3] ss:$0 sm:$0xff] }
  0x16   :  { %143 = vmatpush1.msra.mxu0 %v106_v10  ;;  %596 = vmatmul.mubr.msk.f32.vlgmr.msra.gmra.mxu1 %vm206_vm4, %v200_v28  ;;  %v370_v5 = vld [vmem:[%s955_s7 + $0x20] sm:$0xff] }
  0x17   :  { %144 = vmatprep.subr.mxu0 %v676_v3  ;;  %599 = vmatpush3.msra.mxu1 %v204_v29  ;;  %v366_v9 = vld [vmem:[%s955_s7] sm:$0xff] }
  0x18   :  { %145 = vmatpush1.msra.mxu0 %v105_v11  ;;  %606 = vmatprep.mubr.msk.f32.mxu1 %vm681_vm5, %v676_v3  ;;  %v569_v11 = vld [vmem:[%s954_s6] ss:$0 sm:$0xff] }
  0x19   :  { %146 = vmatprep.subr.mxu0 %v676_v3  ;;  %600 = vmatprep.subr.mxu1 %v676_v3 }
  0x1a   :  { %147 = vmatpush1.msra.mxu0 %v104_v12  ;;  %601 = vmatpush3.msra.mxu1 %v203_v55 }
  0x1b   :  { %148 = vmatprep.subr.mxu0 %v676_v3  ;;  %602 = vmatprep.subr.mxu1 %v676_v3 }
  0x1c   :  { %149 = vmatpush1.msra.mxu0 %v103_v13  ;;  %603 = vmatpush3.msra.mxu1 %v202_v56 }
  0x1d   :  { %150 = vmatprep.subr.mxu0 %v676_v3  ;;  %604 = vmatprep.subr.mxu1 %v676_v3 }
  0x1e   :  { %151 = vmatpush1.msra.mxu0 %v102_v14  ;;  %605 = vmatpush3.msra.mxu1 %v201_v57 }
  0x1f   :  { %152 = vmatprep.subr.mxu0 %v676_v3  ;;  %609 = vmatprep.subr.mxu1 %v676_v3 }
  0x20   :  { %153 = vmatpush1.msra.mxu0 %v101_v15 }
  0x21   :  { %154 = vmatprep.subr.mxu0 %v676_v3 }
  0x22   :  { %155 = vmatpush1.msra.mxu0 %v100_v16  ;;  %v456_v16 = vld [vmem:[#allocation2] sm:$0x1] }
  0x23   :  { %156 = vmatprep.subr.mxu0 %v676_v3 }
  0x24   :  { %157 = vmatpush1.msra.mxu0 %v99_v17  ;;  %v685_v17 = vmov 0  }
  0x25   :  { %158 = vmatprep.subr.mxu0 %v676_v3  ;;  %646 = vset.pattern.permute.xlu1 %v685_v17 }
  0x26   :  { %159 = vmatpush1.msra.mxu0 %v98_v18  ;;  %647 = vset.pattern.permute.xlu0 %v685_v17  ;;  %v570_v18 = vld [vmem:[%s956_s8] ss:$0 sm:$0xff]  ;;  %s686_s8 = smov [#allocation3]  }
  0x27   :  { %184 = vmatprep.subr.mxu0 %v676_v3  ;;  %s556_s12 = sshll.u32 %s686_s8, 4  ;;  %s557_s12 = int_to_ptr.vmem [resolvable:$true] %s556_s12 }
  0x28   :  { %185 = vmatpush2.msra.mxu0 %v117_v19  ;;  %s656_s13 = scalar_lea.vmem %s557_s12, 32  ;;  %p657_p1 = scmp.lt.s32.totalorder %s557_s12, %s557_s12 }
  0x29   :  { %186 = vmatprep.subr.mxu0 %v676_v3 }
  0x2a   :  { %187 = vmatpush2.msra.mxu0 %v116_v20 }
  0x2b   :  { %188 = vmatprep.subr.mxu0 %v676_v3 }
  0x2c   :  { %189 = vmatpush2.msra.mxu0 %v115_v21 }
  0x2d   :  { %190 = vmatprep.subr.mxu0 %v676_v3 }
  0x2e   :  { %191 = vmatpush2.msra.mxu0 %v114_v24 }
  0x76   :  { %v60_v22 = vpop.permute.xlu1 %59  ;;  %v44_v23 = vpop.permute.xlu0 %43 }
  0x77   :  { %v62_v25 = vsel %vm52_vm0, %v60_v22, %v753_v1  ;;  %v53_v30 = vsel %vm52_vm0, %v753_v1, %v44_v23 }
  0x78   :  { %v63_v31 = vsel %vm54_vm1, %v62_v25, %v44_v23 }
  0x7a   :  { %v50_v32 = vpop.permute.xlu1 %49  ;;  %v47_v33 = vpop.permute.xlu0 %46 }
  0x7b   :  { %v55_v34 = vsel %vm54_vm1, %v53_v30, %v47_v33  ;;  %v64_v35 = vsel %vm56_vm2, %v63_v31, %v47_v33 }
  0x7c   :  { %v57_v36 = vsel %vm56_vm2, %v55_v34, %v50_v32  ;;  %v65_v37 = vmul.f32 %v64_v35, %v753_v1 }
  0x7d   :  { %v58_v38 = vmul.f32 %v57_v36, %v753_v1 }
  0x7e   :  { %v74_v39 = vpop.permute.xlu1 %73  ;;  %85 = vrot.lane.b32.xlu1 %v65_v37, %s682_s1  ;;  %v67_v40 = vpop.permute.xlu0 %66 }
  0x7f   :  { %v69_v41 = vsel %vm52_vm0, %v67_v40, %v60_v22  ;;  %v76_v42 = vsel %vm52_vm0, %v74_v39, %v67_v40  ;;  %81 = vrot.lane.b32.xlu0 %v58_v38, %s683_s5 }
  0x80   :  { %v70_v43 = vsel %vm54_vm1, %v69_v41, %v753_v1  ;;  %v77_v44 = vsel %vm54_vm1, %v76_v42, %v60_v22 }
  0x81   :  { %v78_v45 = vsel %vm56_vm2, %v77_v44, %v753_v1  ;;  %v71_v46 = vsel %vm56_vm2, %v70_v43, %v44_v23  ;;  %v455_v23 = vld [vmem:[%s957_s9] sm:$0x1]  ;;  %s652_s9 = scalar_lea.vmem %s557_s12, 16 }
  0x82   :  { %v79_v47 = vmul.f32 %v78_v45, %v753_v1  ;;  %v72_v48 = vmul.f32 %v71_v46, %v753_v1  ;;  %459 = vperm.xlu1 %646, %v456_v16   ;;  %p653_p0 = scmp.ne.s32.totalorder %s557_s12, %s652_s9  ;;  %p658_p2 = scmp.lt.s32.totalorder %s656_s13, %s652_s9 }
  0x84   :  { %565 = vmatprep.mubr.msk.f32.mxu0 %vm92_vm6, %v79_v47  ;;  %89 = vrot.lane.b32.xlu0 %v72_v48, %s684_s28  ;;  %p659_p3 = por %p658_p2, %p657_p1 }
  0x86   :  { %p660_p4 = pnand %p659_p3, %p653_p0 }
  0xd6   :  { %v280_v58 = vpop.f32.mrf.mxu1 }
  0xd8   :  { %v597_v59 = vpop.f32.mrf.mxu1 }
  0xf0   :  { %v86_v51 = vpop.permute.xlu1 %85 }
  0xf1   :  { %v82_v49 = vpop.permute.xlu0 %81 }
  0xf2   :  { %v93_v50 = vsel %vm92_vm6, %v753_v1, %v82_v49  ;;  %v373_v1 = vld [vmem:[%s955_s7 + $0x38] sm:$0xff] }
  0xf3   :  { %v95_v53 = vsel %vm94_vm7, %v93_v50, %v86_v51 }
  0xf6   :  { %v90_v52 = vpop.permute.xlu0 %89 }
  0xf7   :  { %v97_v54 = vsel %vm96_vm8, %v95_v53, %v90_v52 }
  0xf8   :  { %193 = vmatmul.mubr.f32.vlgmr.msra.gmra.mxu0 %v97_v54 }
  0xfd   :  { %v460_v26 = vpop.permute.xlu1 %459 }
 0x1b8   :  { %v194_v61 = vpop.f32.mrf.mxu0 }
 0x1b9   :  { %v195_v62 = vadd.f32 %v564_v60, %v194_v61 }
 0x1ba   :  { %v196_v63 = vpop.f32.mrf.mxu0 }
 0x1bb   :  { %v198_v0 = vmax.f32 %v195_v62, 0.0 }
 0x1bd   :  { %607 = vmatmul.mubr.msk.f32.vlgmr.msra.gmra.mxu1 %vm92_vm6, %v198_v0 }
 0x1be   :  { %610 = vmatpush3.msra.mxu1 %v373_v1  ;;  %625 = vmatprep.mubr.msk.f32.mxu1 %vm681_vm5, %v676_v3 }
 0x1bf   :  { %611 = vmatprep.subr.mxu1 %v676_v3 }
 0x1c0   :  { %612 = vmatpush3.msra.mxu1 %v372_v2 }
 0x1c1   :  { %613 = vmatprep.subr.mxu1 %v676_v3 }
 0x1c2   :  { %614 = vmatpush3.msra.mxu1 %v371_v4 }
 0x1c3   :  { %615 = vmatprep.subr.mxu1 %v676_v3 }
 0x1c4   :  { %616 = vmatpush3.msra.mxu1 %v370_v5 }
 0x1c5   :  { %617 = vmatprep.subr.mxu1 %v676_v3 }
 0x1c6   :  { %618 = vmatpush3.msra.mxu1 %v369_v6 }
 0x1c7   :  { %619 = vmatprep.subr.mxu1 %v676_v3 }
 0x1c8   :  { %620 = vmatpush3.msra.mxu1 %v368_v7 }
 0x1c9   :  { %621 = vmatprep.subr.mxu1 %v676_v3 }
 0x1ca   :  { %622 = vmatpush3.msra.mxu1 %v367_v8 }
 0x1cb   :  { %623 = vmatprep.subr.mxu1 %v676_v3 }
 0x1cc   :  { %624 = vmatpush3.msra.mxu1 %v366_v9 }
 0x1cd   :  { %628 = vmatprep.subr.mxu1 %v676_v3 }
 0x27d   :  { %v353_v10 = vpop.f32.mrf.mxu1 }
 0x27e   :  { %v354_v12 = vadd.f32 %v353_v10, %v280_v58 }
 0x27f   :  { %v608_v13 = vpop.f32.mrf.mxu1 }
 0x280   :  { %v364_v14 = vadd.f32 %v569_v11, %v354_v12 }
 0x282   :  { %v365_v15 = vmax.f32 %v364_v14, 0.0 }
 0x284   :  { %626 = vmatmul.mubr.msk.f32.vlgmr.msra.gmra.mxu1 %vm94_vm7, %v365_v15 }
 0x285   :  { %630 = vmatprep.mubr.msk.f32.mxu1 %vm681_vm5, %v676_v3  ;;  %v462_v3 = vlaneseq }
 0x287   :  { %v463_v24 = vshrl.u32 %v462_v3, 7 }
 0x289   :  { %v464_v25 = vsub.s32 0, %v463_v24 }
 0x28b   :  { %v465_v27 = vrot.slane %v460_v26, %v464_v25 }
 0x344   :  { %v450_v19 = vpop.f32.mrf.mxu1 }
 0x345   :  { %v451_v20 = vadd.f32 %v570_v18, %v450_v19 }
 0x346   :  { %v627_v21 = vpop.f32.mrf.mxu1 }
 0x347   :  { %v454_v22 = vmax.f32 %v451_v20, 0.0 }
 0x349   :  { %629 = vmatpush3.xpose.msk.msra.mxu1 %vm92_vm6, %v454_v22 }
 0x34c   :  { %631 = vmatmul.mubr.msk.f32.vlgmr.msra.gmra.mxu1 %vm92_vm6, %v455_v23 }
 0x40c   :  { %v538_v28 = vpop.f32.mrf.mxu1 }
 0x40d   :  { %v539_v29 = vadd.f32 %v538_v28, %v465_v27 }
 0x40e   :  { %v632_v30 = vpop.f32.mrf.mxu1 }
 0x40f   :  { %v574_v31 = vmul.f32 -1.442695, %v539_v29 }
 0x411   :  { %648 = vpow2.f32 %v574_v31 }
 0x41e   :  { %v649_v32 = vpop.eup %648 }
 0x41f   :  { %v545_v33 = vadd.f32 1.0, %v649_v32 }
 0x421   :  { %650 = vrcp.f32 %v545_v33 }
 0x42e   :  { %v651_v34 = vpop.eup %650 }
 0x42f   :  { %549 = vst.msk [vmem:[#allocation3] sm:$0x1] %vm548_vm9, %v651_v34 }
 0x430   :  { %663 = shalt.err (!%p660_p4)
}
 0x431   :  { %559 = dma.vmem_to_hbm [thread:$0]  %s557_s12, 16, %s959_s11, [#allocation4]  }
 0x432   :  { %672 = dma.done.wait [#allocation4], 16  }
 0x433   :  { %673 = vsyncadd [#allocation4], 4294967280 }
 0x434   :  { %563 = vsyncpa [#allocation4], 1 }

</bundles_post_ra>
